<compile_context>
chip_gen: v7x
topology: tpu7x:2x2x1
jax: 0.10.0
libtpu: 0.0.40
codegen_flags: <defaults>
</compile_context>

<pallas_src>
import jax
import jax.numpy as jnp
from jax import lax
from jax.experimental import pallas as pl
from jax.experimental.pallas import tpu as pltpu


def _text_cls_kernel(offsets_ref, text_ref, table_ref, bias_ref, out_ref):
    """One grid step processes TB bags and writes a (TB, CP) logits block."""
    tile = pl.program_id(0)
    TB, CP = out_ref.shape
    bag0 = tile * TB

    bias = bias_ref[...]  # (1, CP) -- hoisted out of the bag loop

    def bag_body(b, carry):
        start = offsets_ref[bag0 + b]
        end = offsets_ref[bag0 + b + 1]
        count = end - start

        def tok_body(t, acc):
            idx = text_ref[t]
            # 128-lane-dense gather of one folded (already fc-projected) row.
            return acc + table_ref[pl.ds(idx, 1), :]

        acc = lax.fori_loop(start, end, tok_body,
                            jnp.zeros((1, CP), jnp.float32))

        # EmbeddingBag(mode='mean'); empty bags (count==0) keep acc == 0,
        # matching PyTorch (zeros through the bag, bias through the Linear).
        inv = 1.0 / jnp.maximum(count, 1).astype(jnp.float32)
        out_ref[pl.ds(b, 1), :] = acc * inv + bias
        return carry

    lax.fori_loop(0, TB, bag_body, 0)


def text_classification_forward(text, offsets, emb_table, fc_weight, fc_bias,
                                *, bag_tile=None):
    """text: int32 [T] flattened token ids, offsets: int32 [B] bag starts,
    emb_table: [V, D], fc_weight: [C, D] (PyTorch layout), fc_bias: [C]
    -> f32 [B, C] logits."""
    T = int(text.shape[0])
    B = int(offsets.shape[0])
    V, D = emb_table.shape
    C = int(fc_weight.shape[0])

    # ---- host-side prep ----------------------------------------------------
    # Fold fc into the table (valid by linearity of mean & matmul); pad C->CP.
    CP = ((C + 127) // 128) * 128
    folded = jnp.dot(emb_table.astype(jnp.float32),
                     fc_weight.astype(jnp.float32).T,
                     precision=lax.Precision.HIGHEST)           # (V, C)
    folded = jnp.pad(folded, ((0, 0), (0, CP - C)))             # (V, CP)
    bias = jnp.pad(fc_bias.astype(jnp.float32),
                   (0, CP - C)).reshape(1, CP)                  # (1, CP)

    # Bag tiling: TB bags per grid step. Padded bags are empty (start==end==T).
    if bag_tile is None:
        bag_tile = min(128, ((B + 7) // 8) * 8)
    TB = bag_tile
    B_pad = ((B + TB - 1) // TB) * TB
    n_tiles = B_pad // TB

    offsets_ext = jnp.concatenate([
        offsets.astype(jnp.int32),
        jnp.full((B_pad - B + 1,), T, dtype=jnp.int32)])

    # Clamp ids: VMEM loads are unchecked on TPU, OOB ids would silently read
    # adjacent/stale VMEM instead of erroring.
    text_i32 = jnp.clip(text.astype(jnp.int32), 0, V - 1)

    # TODO(synk): for vocabularies whose folded (V, CP) table exceeds scoped
    # VMEM (esp. v7x, 64 MiB physical), keep it in HBM (memory_space=pl.ANY)
    # and DMA the needed rows per bag tile; likewise keep `text` in HBM for
    # very large T instead of SMEM scalar prefetch.
    table_bytes = V * CP * 4
    vmem_limit = int(min(110 * 1024 * 1024,
                         max(32 * 1024 * 1024, 2 * table_bytes + (8 << 20))))

    grid_spec = pltpu.PrefetchScalarGridSpec(
        num_scalar_prefetch=2,
        grid=(n_tiles,),
        in_specs=[
            pl.BlockSpec((V, CP), lambda i, off, txt: (0, 0)),   # folded table
            pl.BlockSpec((1, CP), lambda i, off, txt: (0, 0)),   # bias
        ],
        out_specs=pl.BlockSpec((TB, CP), lambda i, off, txt: (i, 0)),
    )

    out = pl.pallas_call(
        _text_cls_kernel,
        out_shape=jax.ShapeDtypeStruct((B_pad, CP), jnp.float32),
        grid_spec=grid_spec,
        compiler_params=pltpu.CompilerParams(
            dimension_semantics=("parallel",),   # bags are independent
            vmem_limit_bytes=vmem_limit),
    )(offsets_ext, text_i32, folded, bias)

    return out[:B, :C]


def _reference(text, offsets, emb_table, fc_weight, fc_bias):
    # Pure-JAX reference of EmbeddingBag(mean) + Linear (PyTorch semantics).
    T = text.shape[0]
    B = offsets.shape[0]
    ends = jnp.concatenate([offsets[1:], jnp.array([T], dtype=offsets.dtype)])
    rows = []
    for i in range(B):
        s, e = int(offsets[i]), int(ends[i])
        bag = emb_table[text[s:e]]
        rows.append(bag.mean(axis=0) if e > s
                    else jnp.zeros(emb_table.shape[1], jnp.float32))
    embedded = jnp.stack(rows)
    return jnp.dot(embedded, fc_weight.T,
                   precision=lax.Precision.HIGHEST) + fc_bias


if __name__ == "__main__":
    # Small synthetic shapes consistent with the module.
    vocab_size, embed_dim, num_class = 64, 32, 4
    batch = 2

    key = jax.random.PRNGKey(0)
    k_emb, k_w, k_txt = jax.random.split(key, 3)

    initrange = 0.5
    emb_table = jax.random.uniform(
        k_emb, (vocab_size, embed_dim), jnp.float32, -initrange, initrange)
    fc_weight = jax.random.uniform(
        k_w, (num_class, embed_dim), jnp.float32, -initrange, initrange)
    fc_bias = jnp.zeros((num_class,), jnp.float32)   # init_weights() zeroes bias

    # Two bags: 5 tokens and 3 tokens -> flattened text of length 8.
    text = jax.random.randint(k_txt, (8,), 0, vocab_size, dtype=jnp.int32)
    offsets = jnp.array([0, 5], dtype=jnp.int32)

    out = text_classification_forward(text, offsets, emb_table, fc_weight, fc_bias)
    out = jax.block_until_ready(out)

    ref = _reference(text, offsets, emb_table, fc_weight, fc_bias)
    assert out.shape == (batch, num_class), out.shape
    assert jnp.allclose(out, ref, atol=1e-4, rtol=1e-4), (out, ref)

    print("KERNEL_OK")
</pallas_src>

<mosaic_0001>
module attributes {stable_mosaic.version = 11 : i64} {
  func.func @_text_cls_kernel(%arg0: i32, %arg1: memref<9xi32, #tpu.memory_space<smem>>, %arg2: memref<8xi32, #tpu.memory_space<smem>>, %arg3: memref<64x128xf32, #tpu.memory_space<vmem>>, %arg4: memref<1x128xf32, #tpu.memory_space<vmem>>, %arg5: memref<8x128xf32, #tpu.memory_space<vmem>>) attributes {dimension_semantics = [#tpu.dimension_semantics<parallel>], iteration_bounds = array<i64: 1>, scalar_prefetch = 2 : i64, scratch_operands = 0 : i64, tpu.core_type = #tpu.core_type<tc>, window_params = [{pipeline_mode = #tpu.pipeline_mode<synchronous>, transform_indices = @transform_0, window_bounds = array<i64: 64, 128>}, {pipeline_mode = #tpu.pipeline_mode<synchronous>, transform_indices = @transform_1, window_bounds = array<i64: 1, 128>}, {transform_indices = @transform_2, window_bounds = array<i64: 8, 128>}]} {
    %c8_i32 = arith.constant 8 : i32
    %0 = arith.muli %arg0, %c8_i32 : i32
    %c0 = arith.constant 0 : index
    %c0_0 = arith.constant 0 : index
    %1 = vector.load %arg4[%c0, %c0_0] : memref<1x128xf32, #tpu.memory_space<vmem>>, vector<1x128xf32>
    %c0_i32 = arith.constant 0 : i32
    %c8_i32_1 = arith.constant 8 : i32
    %2 = arith.addi %c0_i32, %c8_i32_1 : i32
    %c1_i32 = arith.constant 1 : i32
    scf.for %arg6 = %c0_i32 to %2 step %c1_i32  : i32 {
      %3 = arith.addi %0, %arg6 : i32
      %4 = arith.index_cast %3 : i32 to index
      %5 = memref.load %arg1[%4] : memref<9xi32, #tpu.memory_space<smem>>
      %6 = arith.addi %0, %arg6 : i32
      %c1_i32_3 = arith.constant 1 : i32
      %7 = arith.addi %6, %c1_i32_3 : i32
      %8 = arith.index_cast %7 : i32 to index
      %9 = memref.load %arg1[%8] : memref<9xi32, #tpu.memory_space<smem>>
      %10 = arith.subi %9, %5 : i32
      %cst = arith.constant 0.000000e+00 : f32
      %11 = vector.broadcast %cst : f32 to vector<1x128xf32>
      %12 = arith.subi %9, %5 : i32
      %13 = arith.addi %5, %12 : i32
      %c1_i32_4 = arith.constant 1 : i32
      %14 = scf.for %arg7 = %5 to %13 step %c1_i32_4 iter_args(%arg8 = %11) -> (vector<1x128xf32>)  : i32 {
        %23 = arith.index_cast %arg7 : i32 to index
        %24 = memref.load %arg2[%23] : memref<8xi32, #tpu.memory_space<smem>>
        %25 = arith.index_cast %24 : i32 to index
        %c0_8 = arith.constant 0 : index
        %26 = vector.load %arg3[%25, %c0_8] : memref<64x128xf32, #tpu.memory_space<vmem>>, vector<1x128xf32>
        %27 = arith.addf %arg8, %26 : vector<1x128xf32>
        scf.yield %27 : vector<1x128xf32>
      }
      %c1_i32_5 = arith.constant 1 : i32
      %15 = arith.maxsi %10, %c1_i32_5 : i32
      %16 = arith.sitofp %15 : i32 to f32
      %cst_6 = arith.constant 1.000000e+00 : f32
      %17 = arith.divf %cst_6, %16 : f32
      %18 = vector.broadcast %17 : f32 to vector<1x128xf32>
      %19 = arith.mulf %14, %18 : vector<1x128xf32>
      %20 = arith.addf %19, %1 : vector<1x128xf32>
      %21 = arith.index_cast %arg6 : i32 to index
      %c0_7 = arith.constant 0 : index
      %22 = vector.load %arg5[%21, %c0_7] : memref<8x128xf32, #tpu.memory_space<vmem>>, vector<1x128xf32>
      tpu.vector_store %arg5[%21, %c0_7], %20 {strides = array<i32>} : memref<8x128xf32, #tpu.memory_space<vmem>>, vector<1x128xf32>,
    }
    %c8_i32_2 = arith.constant 8 : i32
    return
  }
  func.func @transform_0(%arg0: i32, %arg1: memref<9xi32, #tpu.memory_space<smem>>, %arg2: memref<8xi32, #tpu.memory_space<smem>>) -> (i32, i32) {
    %c0_i32 = arith.constant 0 : i32
    %c0_i32_0 = arith.constant 0 : i32
    %c0_i32_1 = arith.constant 0 : i32
    return %c0_i32, %c0_i32_0 : i32, i32
  }
  func.func @transform_1(%arg0: i32, %arg1: memref<9xi32, #tpu.memory_space<smem>>, %arg2: memref<8xi32, #tpu.memory_space<smem>>) -> (i32, i32) {
    %c0_i32 = arith.constant 0 : i32
    %c0_i32_0 = arith.constant 0 : i32
    %c0_i32_1 = arith.constant 0 : i32
    return %c0_i32, %c0_i32_0 : i32, i32
  }
  func.func @transform_2(%arg0: i32, %arg1: memref<9xi32, #tpu.memory_space<smem>>, %arg2: memref<8xi32, #tpu.memory_space<smem>>) -> (i32, i32) {
    %c0_i32 = arith.constant 0 : i32
    %c0_i32_0 = arith.constant 0 : i32
    return %arg0, %c0_i32 : i32, i32
  }
}

</mosaic_0001>

<bundles_post_ra>
// kernel: tpu_custom_call.1
= control target key start
LH: loop header
LB: loop body
LE: loop exit
PB: predicated region body
PF: predicated region fallthrough
CT: control target
= control target key end

     0   :  { %s335_s0 = inlined_call_operand.hbm [shape: s32[9], index: 0, kind: input, shape index: {}]   ;;  %s336_s2 = inlined_call_operand.hbm [shape: f32[64,128], index: 2, kind: input, shape index: {}]   ;;  %s337_s3 = inlined_call_operand.vmem [shape: f32[1,128], index: 3, kind: input, shape index: {}]   ;;  %s338_s4 = inlined_call_operand.hbm [shape: f32[8,128], index: 4, kind: output, shape index: {}]   ;;  %s339_s1 = inlined_call_operand.vmem [shape: s32[8], index: 1, kind: input, shape index: {}]  }
   0x1   :  { %s143_s17 = scalar_lea.hbm %s335_s0, 16 }
   0x2   :  { %p144_p0 = scmp.ne.s32.totalorder %s335_s0, %s143_s17  ;;  %p147_p1 = scmp.lt.u32.totalorder %s143_s17, %s335_s0 }
   0x4   :  { %p149_p2 = pnand %p147_p1, %p144_p0 }
   0x6   :  { %152 = shalt.err (!%p149_p2)  }
   0x7   :  { %s247_s22 = smov [#allocation3]   ;;  %s11_s27 = sshll.u32 %s339_s1, 4  ;;  %s12_s27 = int_to_ptr.vmem [resolvable:$true] %s11_s27 }
   0x8   :  { %10 = dma.hbm_to_smem %s335_s0, 16, %s247_s22, [#allocation2] }
   0x9   :  { %s153_s28 = scalar_lea.vmem %s12_s27, 16  ;;  %p158_p4 = scmp.lt.s32.totalorder %s12_s27, %s12_s27 }
   0xa   :  { %p154_p3 = scmp.ne.s32.totalorder %s12_s27, %s153_s28  ;;  %p159_p5 = scmp.lt.s32.totalorder %s153_s28, %s153_s28 }
   0xc   :  { %p160_p6 = por %p159_p5, %p158_p4 }
   0xe   :  { %p161_p7 = pnand %p160_p6, %p154_p3 }
  0x10   :  { %164 = shalt.err (!%p161_p7)  }
  0x11   :  { %s248_s29 = smov [#allocation4]  }
  0x12   :  { %14 = dma.vmem_to_smem %s12_s27, 16, %s248_s29, [#allocation2] }
  0x13   :  { %225 = dma.done.wait [#allocation2], 32 }
  0x14   :  { %226 = vsyncadd [#allocation2], 4294967264 }
  0x15   :  { %16 = sfence }
  0x16   :  { %17 = vsyncpa [#allocation6], 0 }
  0x17   :  { %18 = vsyncpa [#allocation7], 0  ;;  %s249_s0 = smov [#allocation5]   ;;  %s165_s6 = scalar_lea.hbm %s336_s2, 1024 }
  0x18   :  { %s24_s30 = sshll.u32 %s249_s0, 4  ;;  %p166_p8 = scmp.ne.s32.totalorder %s336_s2, %s165_s6  ;;  %s25_s30 = int_to_ptr.vmem [resolvable:$true] %s24_s30 }
  0x19   :  { %p169_p9 = scmp.lt.u32.totalorder %s165_s6, %s336_s2 }
  0x1b   :  { %p171_p10 = pnand %p169_p9, %p166_p8 }
  0x1d   :  { %174 = shalt.err (!%p171_p10)
}
  0x1e   :  { %s175_s11 = scalar_lea.vmem %s25_s30, 1024  ;;  %p180_p12 = scmp.lt.s32.totalorder %s25_s30, %s25_s30 }
  0x1f   :  { %p176_p11 = scmp.ne.s32.totalorder %s25_s30, %s175_s11  ;;  %p181_p13 = scmp.lt.s32.totalorder %s175_s11, %s175_s11 }
  0x21   :  { %p182_p0 = por %p181_p13, %p180_p12 }
  0x23   :  { %p183_p1 = pnand %p182_p0, %p176_p11 }
  0x25   :  { %186 = shalt.err (!%p183_p1)
}
  0x26   :  { %s250_s12 = smov 128   ;;  %s251_s13 = smov 8  }
  0x27   :  { %30 = dma.hbm_to_vmem [thread:$0]  %s336_s2, 1024, %s25_s30, [#allocation6], %s250_s12, %s250_s12, %s251_s13  }
  0x28   :  { %227 = dma.done.wait [#allocation6], 1024  }
  0x29   :  { %228 = vsyncadd [#allocation6], 4294966272  ;;  %v37_v0 = vld [vmem:[%s337_s3] sm:$0x1]  ;;  %s308_s18 = smov 0  }
  0x2a LB: > { %s45_s19 = sld [smem:[#allocation3 + %s233_s18]]   ;;  %s315_s20 = sadd.s32 1, %s233_s18   ;;  %v243_v1 = vmov 0.0   ;;  %s233_s18 = sphi %s308_s18, %s340_s18  }
  0x2b   : > { %s47_s2 = sld [smem:[#allocation3 + %s315_s20]] }
  0x31   : > { %s48_s21 = ssub.s32 %s47_s2, %s45_s19  ;;  %p89_p2 = scmp.ge.s32.totalorder %s45_s19, %s47_s2 }
  0x32   : > { %v235_v2 = vmov (!%p89_p2), 0.0   ;;  %s239_s3 = smov (!%p89_p2), %s45_s19  }
  0x33   : > { %91 = sbr.rel (%p89_p2) target bundleno = 69 (0x45), region = 42 }
  0x3a LB: >> { %s56_s22 = sld [smem:[#allocation4 + %s241_s3]]  ;;  %s52_s3 = sadd.s32 1, %s241_s3   ;;  %s241_s3 = sphi %s239_s3, %s52_s3   ;;  %v237_v2 = vphi %v235_v2, %v236_v2  }
  0x3b   : >> { %p51_p3 = scmp.ge.s32.totalorder %s52_s3, %s47_s2 }
  0x3e   : > { %54 = sbr.rel (!%p51_p3) target bundleno = 58 (0x3a), region = 48 }
  0x40   : >> { %s57_s23 = scalar_lea.vmem [#allocation5], %s56_s22 }
  0x41   : >> { %v58_v3 = vld [vmem:[%s57_s23] sm:$0x1] }
  0x42   : >> { %v59_v4 = vadd.f32 %v237_v2, %v58_v3  }
  0x44   : >> { %v236_v2 = vmov %v59_v4   ;;  %v244_v1 = vmov (%p51_p3), %v59_v4  }
  0x45 PF: > { %p60_p4 = scmp.gt.s32.totalorder %s48_s21, 1  ;;  %s69_s26 = scalar_lea.vmem [#allocation8], %s233_s18  ;;  %v245_v1 = vphi %v243_v1, %v244_v1  }
  0x46   : > { %p40_p5 = scmp.ge.s32.totalorder %s315_s20, 8   ;;  %s340_s18 = smov %s315_s20 }
  0x47   : > { %s342_s21 = smov (!%p60_p4, %s48_s21), 1  ;;  %s252_s27 = smov (%p40_p5), [#allocation8]  }
  0x48   : > { %s62_s24 = scvt.s32.f32 %s342_s21  ;;  %s77_s28 = sshll.u32 (%p40_p5), %s252_s27, 4  ;;  %s78_s28 = int_to_ptr.vmem [resolvable:$true] %s77_s28 }
  0x49   :  { %s187_s29 = scalar_lea.vmem (%p40_p5), %s78_s28, 128  ;;  %p192_p7 = scmp.lt.s32.totalorder (%p40_p5), %s78_s28, %s78_s28 }
  0x4a   : > { %v63_v5 = vstv %s62_s24  ;;  %p188_p6 = scmp.ne.s32.totalorder (%p40_p5), %s78_s28, %s187_s29  ;;  %p193_p8 = scmp.lt.s32.totalorder (%p40_p5), %s187_s29, %s187_s29 }
  0x4b   : > { %141 = vrcp.f32 %v63_v5 }
  0x4c   :  { %p194_p9 = por (%p40_p5), %p193_p8, %p192_p7 }
  0x4e   :  { %p195_p10 = pnand (%p40_p5), %p194_p9, %p188_p6 }
  0x55   : > { %v142_v6 = vpop.eup %141 }
  0x56   : > { %101 = vpush %v142_v6 }
  0x87   : > { %s102_s25 = spop %101  ;;  %42 = sbr.rel (!%p40_p5) target bundleno = 42 (0x2a), region = 59 }
  0x88   : > { %v66_v7 = vstv %s102_s25 }
  0x89   : > { %v67_v8 = vmul.f32 %v245_v1, %v66_v7 }
  0x8b   : > { %v68_v9 = vadd.f32 %v67_v8, %v37_v0 }
  0x8d   : > { %70 = vst [vmem:[%s69_s26] sm:$0x1] %v68_v9 }
  0x8e   :  { %198 = shalt.err (!%p195_p10)
}
  0x8f   :  { %s199_s5 = scalar_lea.hbm %s338_s4, 128 }
  0x90   :  { %p200_p11 = scmp.ne.s32.totalorder %s338_s4, %s199_s5  ;;  %p203_p12 = scmp.lt.u32.totalorder %s199_s5, %s338_s4 }
  0x92   :  { %p205_p13 = pnand %p203_p12, %p200_p11 }
  0x94   :  { %208 = shalt.err (!%p205_p13)
}
  0x95   :  { %80 = dma.vmem_to_hbm [thread:$0]  %s78_s28, 128, %s338_s4, [#allocation7]  }
  0x96   :  { %229 = dma.done.wait [#allocation7], 128  }
  0x97   :  { %230 = vsyncadd [#allocation7], 4294967168 }
  0x98   :  { %84 = vsyncpa [#allocation6], 1 }
  0x99   :  { %85 = vsyncpa [#allocation7], 1 }

</bundles_post_ra>
